<compile_context>
chip_gen: v7x
topology: tpu7x:2x2x1
jax: 0.10.0
libtpu: 0.0.40
codegen_flags: <defaults>
</compile_context>

<pallas_src>
import functools
import numpy as np
import jax
import jax.numpy as jnp
from jax.experimental import pallas as pl
from jax.experimental.pallas import tpu as pltpu


# ----------------------------- glue (plain JAX) -----------------------------

def get_sinusoid_encoding_table(n_position, d_emb_vec, padding_idx=None):
    def cal_angle(position, hid_idx):
        return position / np.power(10000.0, 2.0 * (hid_idx // 2) / d_emb_vec)

    table = np.array(
        [[cal_angle(pos, j) for j in range(d_emb_vec)] for pos in range(n_position)],
        dtype=np.float64,
    )
    table[:, 0::2] = np.sin(table[:, 0::2])
    table[:, 1::2] = np.cos(table[:, 1::2])
    if padding_idx is not None:
        table[padding_idx] = 0.0
    return jnp.asarray(table, dtype=jnp.float32)


def _layer_norm(x, gamma, beta, eps=1e-5):
    # PyTorch nn.LayerNorm: biased variance over last dim, eps inside sqrt.
    mean = jnp.mean(x, axis=-1, keepdims=True)
    var = jnp.mean((x - mean) ** 2, axis=-1, keepdims=True)
    return (x - mean) * jax.lax.rsqrt(var + eps) * gamma + beta


# ------------------------------ Pallas kernel -------------------------------

def encoder_stack_kernel(
    x_ref,
    wqkv_ref, bqkv_ref, wo_ref, bo_ref, ga_ref, ba_ref,
    w1_ref, b1_ref, w2_ref, b2_ref, gf_ref, bf_ref,
    o_ref,
    *, n_head, d_k, d_v, compute_dtype,
):
    layer = pl.program_id(1)

    # Seed the resident activation (the output block itself) from the
    # position-encoded input at the first layer of this batch tile.
    @pl.when(layer == 0)
    def _():
        o_ref[...] = x_ref[...]

    x = o_ref[...]                                   # (Bt, L, D) f32, VMEM-resident
    Bt, L, D = x.shape
    hdk = n_head * d_k

    cast = lambda t: t.astype(compute_dtype)         # matmul-operand dtype

    # ------------------ fused QKV projection (rows = Bt*L) ------------------
    x2 = x.reshape(Bt * L, D)
    qkv = jnp.dot(cast(x2), wqkv_ref[...],
                  preferred_element_type=jnp.float32) + bqkv_ref[...]
    inv_temp = 1.0 / jnp.sqrt(jnp.float32(d_k))
    q = qkv[:, :hdk] * inv_temp                      # scale q once, not the L^2 scores
    k = qkv[:, hdk:2 * hdk]
    v = qkv[:, 2 * hdk:]

    # ------------------ multi-head self attention ---------------------------
    # attn = sum_h softmax(q_h k_h^T) v_h @ Wo_h  + bo + residual
    wo = wo_ref[...]
    attn = x2 + bo_ref[...]                          # fold residual + bias into the acc
    for h in range(n_head):                          # static unroll (n_head small)
        qh = q[:, h * d_k:(h + 1) * d_k].reshape(Bt, L, d_k)
        kh = k[:, h * d_k:(h + 1) * d_k].reshape(Bt, L, d_k)
        vh = v[:, h * d_v:(h + 1) * d_v].reshape(Bt, L, d_v)
        s = jnp.einsum("bld,bmd->blm", cast(qh), cast(kh),
                       preferred_element_type=jnp.float32)
        s = s - jnp.max(s, axis=-1, keepdims=True)
        p = jnp.exp(s)
        p = p * pl.reciprocal(jnp.sum(p, axis=-1, keepdims=True), approx=True)
        ctx = jnp.einsum("blm,bmd->bld", cast(p), cast(vh),
                         preferred_element_type=jnp.float32)
        attn = attn + jnp.dot(cast(ctx.reshape(Bt * L, d_v)),
                              wo[h * d_v:(h + 1) * d_v, :],
                              preferred_element_type=jnp.float32)
    x2 = _layer_norm(attn, ga_ref[...], ba_ref[...])

    # ------------------ position-wise feed-forward ---------------------------
    h1 = jnp.maximum(
        jnp.dot(cast(x2), w1_ref[...], preferred_element_type=jnp.float32) + b1_ref[...],
        0.0).astype(compute_dtype)                   # cast immediately (largest live tensor)
    h2 = jnp.dot(h1, w2_ref[...], preferred_element_type=jnp.float32) + b2_ref[...]
    out = _layer_norm(h2 + x2, gf_ref[...], bf_ref[...])

    # Output block doubles as the layer accumulator (same block index across the
    # "arbitrary" layer axis -> stays resident, single HBM writeback per batch tile).
    o_ref[...] = out.reshape(Bt, L, D).astype(o_ref.dtype)


# ------------------------------ wrapper --------------------------------------

def prepare_encoder_params(layer_params, compute_dtype=jnp.bfloat16):
    """One-time weight stacking / QKV fusion / dtype cast (hoist out of the step)."""
    def stack(name):
        return jnp.stack([p[name] for p in layer_params], axis=0)

    wqkv = jnp.concatenate([stack("wq"), stack("wk"), stack("wv")], axis=-1)
    bqkv = jnp.concatenate([stack("bq"), stack("bk"), stack("bv")], axis=-1)
    # Matmul weights stored in the compute dtype; biases / LN params stay f32.
    return (wqkv.astype(compute_dtype), bqkv,
            stack("wo").astype(compute_dtype), stack("bo"),
            stack("ga"), stack("ba"),
            stack("w1").astype(compute_dtype), stack("b1"),
            stack("w2").astype(compute_dtype), stack("b2"),
            stack("gf"), stack("bf"))


def encoder_forward(src_seq, src_pos, pos_table, prepared_params, *,
                    n_head, d_k, d_v, batch_block=None):
    """Whole encoder stack in one pallas_call: grid = (batch_tiles, n_layers)."""
    B, L, D = src_seq.shape
    params = list(prepared_params)
    n_layers = params[0].shape[0]
    compute_dtype = params[0].dtype
    d_inner = params[6].shape[-1]

    if batch_block is None:
        batch_block = B
    assert B % batch_block == 0
    n_bt = B // batch_block

    # Position-embedding lookup + add (plain-JAX glue, as in the PyTorch forward).
    enc_in = src_seq + jnp.take(pos_table, src_pos, axis=0)

    in_specs = [pl.BlockSpec((batch_block, L, D), lambda b, l: (b, 0, 0))]
    in_specs += [pl.BlockSpec((None,) + p.shape[1:], lambda b, l: (l, 0, 0))
                 for p in params]
    out_spec = pl.BlockSpec((batch_block, L, D), lambda b, l: (b, 0, 0))

    # Explicit scoped-VMEM budget: resident activations (in/out, double-buffered),
    # double-buffered per-layer weight blocks, plus the large live intermediates.
    act_bytes = batch_block * L * D * 4
    weight_bytes = sum(int(np.prod(p.shape[1:])) * p.dtype.itemsize for p in params)
    inter_bytes = batch_block * L * (3 * n_head * d_k + d_inner + n_head * L) * 4
    vmem_limit = int(min(100 * 2**20,
                         max(32 * 2**20,
                             2 * weight_bytes + 8 * act_bytes + 2 * inter_bytes
                             + (4 << 20))))

    kernel = functools.partial(
        encoder_stack_kernel, n_head=n_head, d_k=d_k, d_v=d_v,
        compute_dtype=compute_dtype)

    return pl.pallas_call(
        kernel,
        out_shape=jax.ShapeDtypeStruct((B, L, D), jnp.float32),
        grid_spec=pltpu.PrefetchScalarGridSpec(
            num_scalar_prefetch=0,
            grid=(n_bt, n_layers),
            in_specs=in_specs,
            out_specs=out_spec,
        ),
        compiler_params=pltpu.CompilerParams(
            dimension_semantics=("parallel", "arbitrary"),
            vmem_limit_bytes=vmem_limit,
        ),
    )(enc_in, *params)


# ------------------------------ Encoder params ------------------------------

def init_encoder_params(key, n_layers, d_model, d_inner, n_head, d_k, d_v):
    params = []
    for _ in range(n_layers):
        keys = jax.random.split(key, 8)
        key = keys[0]
        scale = 0.02
        layer = {
            "wq": scale * jax.random.normal(keys[1], (d_model, n_head * d_k), jnp.float32),
            "bq": jnp.zeros((1, n_head * d_k), jnp.float32),
            "wk": scale * jax.random.normal(keys[2], (d_model, n_head * d_k), jnp.float32),
            "bk": jnp.zeros((1, n_head * d_k), jnp.float32),
            "wv": scale * jax.random.normal(keys[3], (d_model, n_head * d_v), jnp.float32),
            "bv": jnp.zeros((1, n_head * d_v), jnp.float32),
            "wo": scale * jax.random.normal(keys[4], (n_head * d_v, d_model), jnp.float32),
            "bo": jnp.zeros((1, d_model), jnp.float32),
            "ga": jnp.ones((1, d_model), jnp.float32),
            "ba": jnp.zeros((1, d_model), jnp.float32),
            "w1": scale * jax.random.normal(keys[5], (d_model, d_inner), jnp.float32),
            "b1": jnp.zeros((1, d_inner), jnp.float32),
            "w2": scale * jax.random.normal(keys[6], (d_inner, d_model), jnp.float32),
            "b2": jnp.zeros((1, d_model), jnp.float32),
            "gf": jnp.ones((1, d_model), jnp.float32),
            "bf": jnp.zeros((1, d_model), jnp.float32),
        }
        params.append(layer)
    return params


# ------------------------------ pure-JAX reference ---------------------------

def encoder_forward_ref(src_seq, src_pos, pos_table, layer_params, *, n_head, d_k, d_v):
    x = src_seq + jnp.take(pos_table, src_pos, axis=0)
    for p in layer_params:
        residual = x
        q = x @ p["wq"] + p["bq"]
        k = x @ p["wk"] + p["bk"]
        v = x @ p["wv"] + p["bv"]
        outs = []
        for h in range(n_head):
            qh = q[..., h * d_k:(h + 1) * d_k]
            kh = k[..., h * d_k:(h + 1) * d_k]
            vh = v[..., h * d_v:(h + 1) * d_v]
            s = jnp.einsum("bld,bmd->blm", qh, kh) / jnp.sqrt(jnp.float32(d_k))
            a = jax.nn.softmax(s, axis=-1)
            outs.append(jnp.einsum("blm,bmd->bld", a, vh))
        ctx = jnp.concatenate(outs, axis=-1)
        x = _layer_norm(ctx @ p["wo"] + p["bo"] + residual, p["ga"], p["ba"])
        residual = x
        h1 = jnp.maximum(x @ p["w1"] + p["b1"], 0.0)
        x = _layer_norm(h1 @ p["w2"] + p["b2"] + residual, p["gf"], p["bf"])
    return x


# ----------------------------------- main ------------------------------------

if __name__ == "__main__":
    batch = 2
    len_seq = 8
    n_head = 2
    d_k = d_v = 16
    d_model = n_head * d_k          # d_word_vec == d_k * n_head == 32
    d_inner = 64
    n_layers = 2

    key = jax.random.PRNGKey(0)
    k_seq, k_param = jax.random.split(key)

    src_seq = jax.random.normal(k_seq, (batch, len_seq, d_model), jnp.float32)
    src_pos = jnp.tile(jnp.arange(len_seq, dtype=jnp.int32)[None, :], (batch, 1))

    pos_table = get_sinusoid_encoding_table(len_seq, d_model, padding_idx=0)
    layer_params = init_encoder_params(k_param, n_layers, d_model, d_inner,
                                       n_head, d_k, d_v)

    # High-precision XLA reference.
    with jax.default_matmul_precision("float32"):
        ref = encoder_forward_ref(src_seq, src_pos, pos_table, layer_params,
                                  n_head=n_head, d_k=d_k, d_v=d_v)
        ref = jax.block_until_ready(ref)

    # f32 matmul path, single batch tile (tolerance covers the approximate
    # softmax reciprocal and MXU f32 pass decomposition).
    p_f32 = prepare_encoder_params(layer_params, compute_dtype=jnp.float32)
    out = encoder_forward(src_seq, src_pos, pos_table, p_f32,
                          n_head=n_head, d_k=d_k, d_v=d_v)
    out = jax.block_until_ready(out)
    np.testing.assert_allclose(np.asarray(out), np.asarray(ref), rtol=1e-2, atol=1e-2)

    # bf16 matmul path (recommended default on all generations), batch split into
    # two tiles to exercise the "parallel" batch-tile grid axis (2 TCs on v7x).
    p_bf16 = prepare_encoder_params(layer_params, compute_dtype=jnp.bfloat16)
    out_bf16 = encoder_forward(src_seq, src_pos, pos_table, p_bf16,
                               n_head=n_head, d_k=d_k, d_v=d_v, batch_block=1)
    out_bf16 = jax.block_until_ready(out_bf16)
    np.testing.assert_allclose(np.asarray(out_bf16), np.asarray(ref), rtol=5e-2, atol=5e-2)

    print("KERNEL_OK")
</pallas_src>

<mosaic_0001>
module attributes {stable_mosaic.version = 11 : i64} {
  func.func @encoder_stack_kernel(%arg0: i32, %arg1: i32, %arg2: memref<2x8x32xf32, #tpu.memory_space<vmem>>, %arg3: memref<1x32x96xf32, #tpu.memory_space<vmem>>, %arg4: memref<1x1x96xf32, #tpu.memory_space<vmem>>, %arg5: memref<1x32x32xf32, #tpu.memory_space<vmem>>, %arg6: memref<1x1x32xf32, #tpu.memory_space<vmem>>, %arg7: memref<1x1x32xf32, #tpu.memory_space<vmem>>, %arg8: memref<1x1x32xf32, #tpu.memory_space<vmem>>, %arg9: memref<1x32x64xf32, #tpu.memory_space<vmem>>, %arg10: memref<1x1x64xf32, #tpu.memory_space<vmem>>, %arg11: memref<1x64x32xf32, #tpu.memory_space<vmem>>, %arg12: memref<1x1x32xf32, #tpu.memory_space<vmem>>, %arg13: memref<1x1x32xf32, #tpu.memory_space<vmem>>, %arg14: memref<1x1x32xf32, #tpu.memory_space<vmem>>, %arg15: memref<2x8x32xf32, #tpu.memory_space<vmem>>) attributes {dimension_semantics = [#tpu.dimension_semantics<parallel>, #tpu.dimension_semantics<arbitrary>], iteration_bounds = array<i64: 1, 2>, scalar_prefetch = 0 : i64, scratch_operands = 0 : i64, tpu.core_type = #tpu.core_type<tc>, window_params = [{transform_indices = @transform_0, window_bounds = array<i64: 2, 8, 32>}, {transform_indices = @transform_1, window_bounds = array<i64: 1, 32, 96>}, {transform_indices = @transform_2, window_bounds = array<i64: 1, 1, 96>}, {transform_indices = @transform_3, window_bounds = array<i64: 1, 32, 32>}, {transform_indices = @transform_4, window_bounds = array<i64: 1, 1, 32>}, {transform_indices = @transform_5, window_bounds = array<i64: 1, 1, 32>}, {transform_indices = @transform_6, window_bounds = array<i64: 1, 1, 32>}, {transform_indices = @transform_7, window_bounds = array<i64: 1, 32, 64>}, {transform_indices = @transform_8, window_bounds = array<i64: 1, 1, 64>}, {transform_indices = @transform_9, window_bounds = array<i64: 1, 64, 32>}, {transform_indices = @transform_10, window_bounds = array<i64: 1, 1, 32>}, {transform_indices = @transform_11, window_bounds = array<i64: 1, 1, 32>}, {transform_indices = @transform_12, window_bounds = array<i64: 1, 1, 32>}, {transform_indices = @transform_13, window_bounds = array<i64: 2, 8, 32>}]} {
    %c0_i32 = arith.constant 0 : i32
    %0 = arith.cmpi eq, %arg1, %c0_i32 : i32
    %1 = arith.extui %0 : i1 to i32
    %c0_i32_0 = arith.constant 0 : i32
    %2 = arith.cmpi ne, %1, %c0_i32_0 : i32
    scf.if %2 {
      %c0_67 = arith.constant 0 : index
      %c0_68 = arith.constant 0 : index
      %c0_69 = arith.constant 0 : index
      %140 = vector.load %arg2[%c0_67, %c0_68, %c0_69] : memref<2x8x32xf32, #tpu.memory_space<vmem>>, vector<2x8x32xf32>
      %c0_70 = arith.constant 0 : index
      %c0_71 = arith.constant 0 : index
      %c0_72 = arith.constant 0 : index
      %141 = vector.load %arg15[%c0_70, %c0_71, %c0_72] : memref<2x8x32xf32, #tpu.memory_space<vmem>>, vector<2x8x32xf32>
      tpu.vector_store %arg15[%c0_70, %c0_71, %c0_72], %140 {strides = array<i32>} : memref<2x8x32xf32, #tpu.memory_space<vmem>>, vector<2x8x32xf32>,
    } else {
    }
    %c0 = arith.constant 0 : index
    %c0_1 = arith.constant 0 : index
    %c0_2 = arith.constant 0 : index
    %3 = vector.load %arg15[%c0, %c0_1, %c0_2] : memref<2x8x32xf32, #tpu.memory_space<vmem>>, vector<2x8x32xf32>
    %4 = vector.shape_cast %3 : vector<2x8x32xf32> to vector<16x32xf32>
    %c0_3 = arith.constant 0 : index
    %c0_4 = arith.constant 0 : index
    %c0_5 = arith.constant 0 : index
    %5 = vector.load %arg3[%c0_3, %c0_4, %c0_5] : memref<1x32x96xf32, #tpu.memory_space<vmem>>, vector<1x32x96xf32>
    %6 = vector.shape_cast %5 : vector<1x32x96xf32> to vector<32x96xf32>
    %cst = arith.constant dense<0.000000e+00> : vector<16x96xf32>
    %7 = tpu.matmul %4, %6, %cst {dimension_numbers = #tpu.dot_dimension_numbers<[1], [0], [0], [1], [0, 0, 1, 1], [], []>} : vector<16x32xf32>, vector<32x96xf32>, vector<16x96xf32> -> vector<16x96xf32>
    %c0_6 = arith.constant 0 : index
    %c0_7 = arith.constant 0 : index
    %c0_8 = arith.constant 0 : index
    %8 = vector.load %arg4[%c0_6, %c0_7, %c0_8] : memref<1x1x96xf32, #tpu.memory_space<vmem>>, vector<1x1x96xf32>
    %9 = vector.shape_cast %8 : vector<1x1x96xf32> to vector<1x96xf32>
    %10 = vector.broadcast %9 : vector<1x96xf32> to vector<16x96xf32>
    %11 = arith.addf %7, %10 : vector<16x96xf32>
    %cst_9 = arith.constant 1.600000e+01 : f32
    %12 = math.sqrt %cst_9 : f32
    %cst_10 = arith.constant 1.000000e+00 : f32
    %13 = arith.divf %cst_10, %12 : f32
    %14 = vector.extract_strided_slice %11 {offsets = [0, 0], sizes = [16, 32], strides = [1, 1]} : vector<16x96xf32> to vector<16x32xf32>
    %15 = vector.broadcast %13 : f32 to vector<16x32xf32>
    %16 = arith.mulf %14, %15 : vector<16x32xf32>
    %17 = vector.extract_strided_slice %11 {offsets = [0, 32], sizes = [16, 32], strides = [1, 1]} : vector<16x96xf32> to vector<16x32xf32>
    %18 = vector.extract_strided_slice %11 {offsets = [0, 64], sizes = [16, 32], strides = [1, 1]} : vector<16x96xf32> to vector<16x32xf32>
    %c0_11 = arith.constant 0 : index
    %c0_12 = arith.constant 0 : index
    %c0_13 = arith.constant 0 : index
    %19 = vector.load %arg5[%c0_11, %c0_12, %c0_13] : memref<1x32x32xf32, #tpu.memory_space<vmem>>, vector<1x32x32xf32>
    %20 = vector.shape_cast %19 : vector<1x32x32xf32> to vector<32x32xf32>
    %c0_14 = arith.constant 0 : index
    %c0_15 = arith.constant 0 : index
    %c0_16 = arith.constant 0 : index
    %21 = vector.load %arg6[%c0_14, %c0_15, %c0_16] : memref<1x1x32xf32, #tpu.memory_space<vmem>>, vector<1x1x32xf32>
    %22 = vector.shape_cast %21 : vector<1x1x32xf32> to vector<1x32xf32>
    %23 = vector.broadcast %22 : vector<1x32xf32> to vector<16x32xf32>
    %24 = arith.addf %4, %23 : vector<16x32xf32>
    %25 = vector.extract_strided_slice %16 {offsets = [0, 0], sizes = [16, 16], strides = [1, 1]} : vector<16x32xf32> to vector<16x16xf32>
    %26 = vector.shape_cast %25 : vector<16x16xf32> to vector<2x8x16xf32>
    %27 = vector.extract_strided_slice %17 {offsets = [0, 0], sizes = [16, 16], strides = [1, 1]} : vector<16x32xf32> to vector<16x16xf32>
    %28 = vector.shape_cast %27 : vector<16x16xf32> to vector<2x8x16xf32>
    %29 = vector.extract_strided_slice %18 {offsets = [0, 0], sizes = [16, 16], strides = [1, 1]} : vector<16x32xf32> to vector<16x16xf32>
    %30 = vector.shape_cast %29 : vector<16x16xf32> to vector<2x8x16xf32>
    "tpu.trace_start"() <{level = 10 : i32, message = "bld,bmd->blm"}> : () -> ()
    %cst_17 = arith.constant dense<0.000000e+00> : vector<2x8x8xf32>
    %31 = tpu.matmul %26, %28, %cst_17 {dimension_numbers = #tpu.dot_dimension_numbers<[2], [2], [1], [1], [0, 0, 0, 1, 1, 1], [0], [0]>} : vector<2x8x16xf32>, vector<2x8x16xf32>, vector<2x8x8xf32> -> vector<2x8x8xf32>
    "tpu.trace_stop"() : () -> ()
    %cst_18 = arith.constant dense<0xFF800000> : vector<2x8xf32>
    %32 = vector.multi_reduction <maximumf>, %31, %cst_18 [2] : vector<2x8x8xf32> to vector<2x8xf32>
    %33 = vector.shape_cast %32 : vector<2x8xf32> to vector<2x8x1xf32>
    %34 = vector.broadcast %33 : vector<2x8x1xf32> to vector<2x8x8xf32>
    %35 = arith.subf %31, %34 : vector<2x8x8xf32>
    %36 = math.exp %35 : vector<2x8x8xf32>
    %cst_19 = arith.constant dense<0.000000e+00> : vector<2x8xf32>
    %37 = vector.multi_reduction <add>, %36, %cst_19 [2] : vector<2x8x8xf32> to vector<2x8xf32>
    %38 = vector.shape_cast %37 : vector<2x8xf32> to vector<2x8x1xf32>
    %39 = tpu.reciprocal %38 {approx = true} : vector<2x8x1xf32> -> vector<2x8x1xf32>
    %40 = vector.broadcast %39 : vector<2x8x1xf32> to vector<2x8x8xf32>
    %41 = arith.mulf %36, %40 : vector<2x8x8xf32>
    "tpu.trace_start"() <{level = 10 : i32, message = "blm,bmd->bld"}> : () -> ()
    %cst_20 = arith.constant dense<0.000000e+00> : vector<2x8x16xf32>
    %42 = tpu.matmul %41, %30, %cst_20 {dimension_numbers = #tpu.dot_dimension_numbers<[2], [1], [1], [2], [0, 0, 0, 1, 1, 2], [0], [0]>} : vector<2x8x8xf32>, vector<2x8x16xf32>, vector<2x8x16xf32> -> vector<2x8x16xf32>
    "tpu.trace_stop"() : () -> ()
    %43 = vector.shape_cast %42 : vector<2x8x16xf32> to vector<16x16xf32>
    %44 = vector.extract_strided_slice %20 {offsets = [0, 0], sizes = [16, 32], strides = [1, 1]} : vector<32x32xf32> to vector<16x32xf32>
    %cst_21 = arith.constant dense<0.000000e+00> : vector<16x32xf32>
    %45 = tpu.matmul %43, %44, %cst_21 {dimension_numbers = #tpu.dot_dimension_numbers<[1], [0], [0], [1], [0, 0, 1, 1], [], []>} : vector<16x16xf32>, vector<16x32xf32>, vector<16x32xf32> -> vector<16x32xf32>
    %46 = arith.addf %24, %45 : vector<16x32xf32>
    %47 = vector.extract_strided_slice %16 {offsets = [0, 16], sizes = [16, 16], strides = [1, 1]} : vector<16x32xf32> to vector<16x16xf32>
    %48 = vector.shape_cast %47 : vector<16x16xf32> to vector<2x8x16xf32>
    %49 = vector.extract_strided_slice %17 {offsets = [0, 16], sizes = [16, 16], strides = [1, 1]} : vector<16x32xf32> to vector<16x16xf32>
    %50 = vector.shape_cast %49 : vector<16x16xf32> to vector<2x8x16xf32>
    %51 = vector.extract_strided_slice %18 {offsets = [0, 16], sizes = [16, 16], strides = [1, 1]} : vector<16x32xf32> to vector<16x16xf32>
    %52 = vector.shape_cast %51 : vector<16x16xf32> to vector<2x8x16xf32>
    "tpu.trace_start"() <{level = 10 : i32, message = "bld,bmd->blm"}> : () -> ()
    %cst_22 = arith.constant dense<0.000000e+00> : vector<2x8x8xf32>
    %53 = tpu.matmul %48, %50, %cst_22 {dimension_numbers = #tpu.dot_dimension_numbers<[2], [2], [1], [1], [0, 0, 0, 1, 1, 1], [0], [0]>} : vector<2x8x16xf32>, vector<2x8x16xf32>, vector<2x8x8xf32> -> vector<2x8x8xf32>
    "tpu.trace_stop"() : () -> ()
    %cst_23 = arith.constant dense<0xFF800000> : vector<2x8xf32>
    %54 = vector.multi_reduction <maximumf>, %53, %cst_23 [2] : vector<2x8x8xf32> to vector<2x8xf32>
    %55 = vector.shape_cast %54 : vector<2x8xf32> to vector<2x8x1xf32>
    %56 = vector.broadcast %55 : vector<2x8x1xf32> to vector<2x8x8xf32>
    %57 = arith.subf %53, %56 : vector<2x8x8xf32>
    %58 = math.exp %57 : vector<2x8x8xf32>
    %cst_24 = arith.constant dense<0.000000e+00> : vector<2x8xf32>
    %59 = vector.multi_reduction <add>, %58, %cst_24 [2] : vector<2x8x8xf32> to vector<2x8xf32>
    %60 = vector.shape_cast %59 : vector<2x8xf32> to vector<2x8x1xf32>
    %61 = tpu.reciprocal %60 {approx = true} : vector<2x8x1xf32> -> vector<2x8x1xf32>
    %62 = vector.broadcast %61 : vector<2x8x1xf32> to vector<2x8x8xf32>
    %63 = arith.mulf %58, %62 : vector<2x8x8xf32>
    "tpu.trace_start"() <{level = 10 : i32, message = "blm,bmd->bld"}> : () -> ()
    %cst_25 = arith.constant dense<0.000000e+00> : vector<2x8x16xf32>
    %64 = tpu.matmul %63, %52, %cst_25 {dimension_numbers = #tpu.dot_dimension_numbers<[2], [1], [1], [2], [0, 0, 0, 1, 1, 2], [0], [0]>} : vector<2x8x8xf32>, vector<2x8x16xf32>, vector<2x8x16xf32> -> vector<2x8x16xf32>
    "tpu.trace_stop"() : () -> ()
    %65 = vector.shape_cast %64 : vector<2x8x16xf32> to vector<16x16xf32>
    %66 = vector.extract_strided_slice %20 {offsets = [16, 0], sizes = [16, 32], strides = [1, 1]} : vector<32x32xf32> to vector<16x32xf32>
    %cst_26 = arith.constant dense<0.000000e+00> : vector<16x32xf32>
    %67 = tpu.matmul %65, %66, %cst_26 {dimension_numbers = #tpu.dot_dimension_numbers<[1], [0], [0], [1], [0, 0, 1, 1], [], []>} : vector<16x16xf32>, vector<16x32xf32>, vector<16x32xf32> -> vector<16x32xf32>
    %68 = arith.addf %46, %67 : vector<16x32xf32>
    %c0_27 = arith.constant 0 : index
    %c0_28 = arith.constant 0 : index
    %c0_29 = arith.constant 0 : index
    %69 = vector.load %arg7[%c0_27, %c0_28, %c0_29] : memref<1x1x32xf32, #tpu.memory_space<vmem>>, vector<1x1x32xf32>
    %70 = vector.shape_cast %69 : vector<1x1x32xf32> to vector<1x32xf32>
    %c0_30 = arith.constant 0 : index
    %c0_31 = arith.constant 0 : index
    %c0_32 = arith.constant 0 : index
    %71 = vector.load %arg8[%c0_30, %c0_31, %c0_32] : memref<1x1x32xf32, #tpu.memory_space<vmem>>, vector<1x1x32xf32>
    %72 = vector.shape_cast %71 : vector<1x1x32xf32> to vector<1x32xf32>
    %cst_33 = arith.constant dense<0.000000e+00> : vector<16xf32>
    %73 = vector.multi_reduction <add>, %68, %cst_33 [1] : vector<16x32xf32> to vector<16xf32>
    %74 = vector.shape_cast %73 : vector<16xf32> to vector<16x1xf32>
    %cst_34 = arith.constant 3.200000e+01 : f32
    %75 = vector.broadcast %cst_34 : f32 to vector<16x1xf32>
    %76 = arith.divf %74, %75 : vector<16x1xf32>
    %77 = vector.broadcast %76 : vector<16x1xf32> to vector<16x32xf32>
    %78 = arith.subf %68, %77 : vector<16x32xf32>
    %79 = arith.mulf %78, %78 : vector<16x32xf32>
    %cst_35 = arith.constant dense<0.000000e+00> : vector<16xf32>
    %80 = vector.multi_reduction <add>, %79, %cst_35 [1] : vector<16x32xf32> to vector<16xf32>
    %81 = vector.shape_cast %80 : vector<16xf32> to vector<16x1xf32>
    %cst_36 = arith.constant 3.200000e+01 : f32
    %82 = vector.broadcast %cst_36 : f32 to vector<16x1xf32>
    %83 = arith.divf %81, %82 : vector<16x1xf32>
    %84 = vector.broadcast %76 : vector<16x1xf32> to vector<16x32xf32>
    %85 = arith.subf %68, %84 : vector<16x32xf32>
    %cst_37 = arith.constant 9.99999974E-6 : f32
    %86 = vector.broadcast %cst_37 : f32 to vector<16x1xf32>
    %87 = arith.addf %83, %86 : vector<16x1xf32>
    %88 = math.rsqrt %87 : vector<16x1xf32>
    %89 = vector.broadcast %88 : vector<16x1xf32> to vector<16x32xf32>
    %90 = arith.mulf %85, %89 : vector<16x32xf32>
    %91 = vector.broadcast %70 : vector<1x32xf32> to vector<16x32xf32>
    %92 = arith.mulf %90, %91 : vector<16x32xf32>
    %93 = vector.broadcast %72 : vector<1x32xf32> to vector<16x32xf32>
    %94 = arith.addf %92, %93 : vector<16x32xf32>
    %c0_38 = arith.constant 0 : index
    %c0_39 = arith.constant 0 : index
    %c0_40 = arith.constant 0 : index
    %95 = vector.load %arg9[%c0_38, %c0_39, %c0_40] : memref<1x32x64xf32, #tpu.memory_space<vmem>>, vector<1x32x64xf32>
    %96 = vector.shape_cast %95 : vector<1x32x64xf32> to vector<32x64xf32>
    %cst_41 = arith.constant dense<0.000000e+00> : vector<16x64xf32>
    %97 = tpu.matmul %94, %96, %cst_41 {dimension_numbers = #tpu.dot_dimension_numbers<[1], [0], [0], [1], [0, 0, 1, 1], [], []>} : vector<16x32xf32>, vector<32x64xf32>, vector<16x64xf32> -> vector<16x64xf32>
    %c0_42 = arith.constant 0 : index
    %c0_43 = arith.constant 0 : index
    %c0_44 = arith.constant 0 : index
    %98 = vector.load %arg10[%c0_42, %c0_43, %c0_44] : memref<1x1x64xf32, #tpu.memory_space<vmem>>, vector<1x1x64xf32>
    %99 = vector.shape_cast %98 : vector<1x1x64xf32> to vector<1x64xf32>
    %100 = vector.broadcast %99 : vector<1x64xf32> to vector<16x64xf32>
    %101 = arith.addf %97, %100 : vector<16x64xf32>
    %cst_45 = arith.constant 0.000000e+00 : f32
    %102 = vector.broadcast %cst_45 : f32 to vector<16x64xf32>
    %103 = arith.maximumf %101, %102 : vector<16x64xf32>
    %c0_46 = arith.constant 0 : index
    %c0_47 = arith.constant 0 : index
    %c0_48 = arith.constant 0 : index
    %104 = vector.load %arg11[%c0_46, %c0_47, %c0_48] : memref<1x64x32xf32, #tpu.memory_space<vmem>>, vector<1x64x32xf32>
    %105 = vector.shape_cast %104 : vector<1x64x32xf32> to vector<64x32xf32>
    %cst_49 = arith.constant dense<0.000000e+00> : vector<16x32xf32>
    %106 = tpu.matmul %103, %105, %cst_49 {dimension_numbers = #tpu.dot_dimension_numbers<[1], [0], [0], [1], [0, 0, 1, 1], [], []>} : vector<16x64xf32>, vector<64x32xf32>, vector<16x32xf32> -> vector<16x32xf32>
    %c0_50 = arith.constant 0 : index
    %c0_51 = arith.constant 0 : index
    %c0_52 = arith.constant 0 : index
    %107 = vector.load %arg12[%c0_50, %c0_51, %c0_52] : memref<1x1x32xf32, #tpu.memory_space<vmem>>, vector<1x1x32xf32>
    %108 = vector.shape_cast %107 : vector<1x1x32xf32> to vector<1x32xf32>
    %109 = vector.broadcast %108 : vector<1x32xf32> to vector<16x32xf32>
    %110 = arith.addf %106, %109 : vector<16x32xf32>
    %111 = arith.addf %110, %94 : vector<16x32xf32>
    %c0_53 = arith.constant 0 : index
    %c0_54 = arith.constant 0 : index
    %c0_55 = arith.constant 0 : index
    %112 = vector.load %arg13[%c0_53, %c0_54, %c0_55] : memref<1x1x32xf32, #tpu.memory_space<vmem>>, vector<1x1x32xf32>
    %113 = vector.shape_cast %112 : vector<1x1x32xf32> to vector<1x32xf32>
    %c0_56 = arith.constant 0 : index
    %c0_57 = arith.constant 0 : index
    %c0_58 = arith.constant 0 : index
    %114 = vector.load %arg14[%c0_56, %c0_57, %c0_58] : memref<1x1x32xf32, #tpu.memory_space<vmem>>, vector<1x1x32xf32>
    %115 = vector.shape_cast %114 : vector<1x1x32xf32> to vector<1x32xf32>
    %cst_59 = arith.constant dense<0.000000e+00> : vector<16xf32>
    %116 = vector.multi_reduction <add>, %111, %cst_59 [1] : vector<16x32xf32> to vector<16xf32>
    %117 = vector.shape_cast %116 : vector<16xf32> to vector<16x1xf32>
    %cst_60 = arith.constant 3.200000e+01 : f32
    %118 = vector.broadcast %cst_60 : f32 to vector<16x1xf32>
    %119 = arith.divf %117, %118 : vector<16x1xf32>
    %120 = vector.broadcast %119 : vector<16x1xf32> to vector<16x32xf32>
    %121 = arith.subf %111, %120 : vector<16x32xf32>
    %122 = arith.mulf %121, %121 : vector<16x32xf32>
    %cst_61 = arith.constant dense<0.000000e+00> : vector<16xf32>
    %123 = vector.multi_reduction <add>, %122, %cst_61 [1] : vector<16x32xf32> to vector<16xf32>
    %124 = vector.shape_cast %123 : vector<16xf32> to vector<16x1xf32>
    %cst_62 = arith.constant 3.200000e+01 : f32
    %125 = vector.broadcast %cst_62 : f32 to vector<16x1xf32>
    %126 = arith.divf %124, %125 : vector<16x1xf32>
    %127 = vector.broadcast %119 : vector<16x1xf32> to vector<16x32xf32>
    %128 = arith.subf %111, %127 : vector<16x32xf32>
    %cst_63 = arith.constant 9.99999974E-6 : f32
    %129 = vector.broadcast %cst_63 : f32 to vector<16x1xf32>
    %130 = arith.addf %126, %129 : vector<16x1xf32>
    %131 = math.rsqrt %130 : vector<16x1xf32>
    %132 = vector.broadcast %131 : vector<16x1xf32> to vector<16x32xf32>
    %133 = arith.mulf %128, %132 : vector<16x32xf32>
    %134 = vector.broadcast %113 : vector<1x32xf32> to vector<16x32xf32>
    %135 = arith.mulf %133, %134 : vector<16x32xf32>
    %136 = vector.broadcast %115 : vector<1x32xf32> to vector<16x32xf32>
    %137 = arith.addf %135, %136 : vector<16x32xf32>
    %138 = vector.shape_cast %137 : vector<16x32xf32> to vector<2x8x32xf32>
    %c0_64 = arith.constant 0 : index
    %c0_65 = arith.constant 0 : index
    %c0_66 = arith.constant 0 : index
    %139 = vector.load %arg15[%c0_64, %c0_65, %c0_66] : memref<2x8x32xf32, #tpu.memory_space<vmem>>, vector<2x8x32xf32>
    tpu.vector_store %arg15[%c0_64, %c0_65, %c0_66], %138 {strides = array<i32>} : memref<2x8x32xf32, #tpu.memory_space<vmem>>, vector<2x8x32xf32>,
    return
  }
  func.func @transform_0(%arg0: i32, %arg1: i32) -> (i32, i32, i32) {
    %c0_i32 = arith.constant 0 : i32
    %c0_i32_0 = arith.constant 0 : i32
    %c0_i32_1 = arith.constant 0 : i32
    return %arg0, %c0_i32, %c0_i32_0 : i32, i32, i32
  }
  func.func @transform_1(%arg0: i32, %arg1: i32) -> (i32, i32, i32) {
    %c0_i32 = arith.constant 0 : i32
    %c0_i32_0 = arith.constant 0 : i32
    %c0_i32_1 = arith.constant 0 : i32
    return %arg1, %c0_i32, %c0_i32_0 : i32, i32, i32
  }
  func.func @transform_2(%arg0: i32, %arg1: i32) -> (i32, i32, i32) {
    %c0_i32 = arith.constant 0 : i32
    %c0_i32_0 = arith.constant 0 : i32
    %c0_i32_1 = arith.constant 0 : i32
    return %arg1, %c0_i32, %c0_i32_0 : i32, i32, i32
  }
  func.func @transform_3(%arg0: i32, %arg1: i32) -> (i32, i32, i32) {
    %c0_i32 = arith.constant 0 : i32
    %c0_i32_0 = arith.constant 0 : i32
    %c0_i32_1 = arith.constant 0 : i32
    return %arg1, %c0_i32, %c0_i32_0 : i32, i32, i32
  }
  func.func @transform_4(%arg0: i32, %arg1: i32) -> (i32, i32, i32) {
    %c0_i32 = arith.constant 0 : i32
    %c0_i32_0 = arith.constant 0 : i32
    %c0_i32_1 = arith.constant 0 : i32
    return %arg1, %c0_i32, %c0_i32_0 : i32, i32, i32
  }
  func.func @transform_5(%arg0: i32, %arg1: i32) -> (i32, i32, i32) {
    %c0_i32 = arith.constant 0 : i32
    %c0_i32_0 = arith.constant 0 : i32
    %c0_i32_1 = arith.constant 0 : i32
    return %arg1, %c0_i32, %c0_i32_0 : i32, i32, i32
  }
  func.func @transform_6(%arg0: i32, %arg1: i32) -> (i32, i32, i32) {
    %c0_i32 = arith.constant 0 : i32
    %c0_i32_0 = arith.constant 0 : i32
    %c0_i32_1 = arith.constant 0 : i32
    return %arg1, %c0_i32, %c0_i32_0 : i32, i32, i32
  }
  func.func @transform_7(%arg0: i32, %arg1: i32) -> (i32, i32, i32) {
    %c0_i32 = arith.constant 0 : i32
    %c0_i32_0 = arith.constant 0 : i32
    %c0_i32_1 = arith.constant 0 : i32
    return %arg1, %c0_i32, %c0_i32_0 : i32, i32, i32
  }
  func.func @transform_8(%arg0: i32, %arg1: i32) -> (i32, i32, i32) {
    %c0_i32 = arith.constant 0 : i32
    %c0_i32_0 = arith.constant 0 : i32
    %c0_i32_1 = arith.constant 0 : i32
    return %arg1, %c0_i32, %c0_i32_0 : i32, i32, i32
  }
  func.func @transform_9(%arg0: i32, %arg1: i32) -> (i32, i32, i32) {
    %c0_i32 = arith.constant 0 : i32
    %c0_i32_0 = arith.constant 0 : i32
    %c0_i32_1 = arith.constant 0 : i32
    return %arg1, %c0_i32, %c0_i32_0 : i32, i32, i32
  }
  func.func @transform_10(%arg0: i32, %arg1: i32) -> (i32, i32, i32) {
    %c0_i32 = arith.constant 0 : i32
    %c0_i32_0 = arith.constant 0 : i32
    %c0_i32_1 = arith.constant 0 : i32
    return %arg1, %c0_i32, %c0_i32_0 : i32, i32, i32
  }
  func.func @transform_11(%arg0: i32, %arg1: i32) -> (i32, i32, i32) {
    %c0_i32 = arith.constant 0 : i32
    %c0_i32_0 = arith.constant 0 : i32
    %c0_i32_1 = arith.constant 0 : i32
    return %arg1, %c0_i32, %c0_i32_0 : i32, i32, i32
  }
  func.func @transform_12(%arg0: i32, %arg1: i32) -> (i32, i32, i32) {
    %c0_i32 = arith.constant 0 : i32
    %c0_i32_0 = arith.constant 0 : i32
    %c0_i32_1 = arith.constant 0 : i32
    return %arg1, %c0_i32, %c0_i32_0 : i32, i32, i32
  }
  func.func @transform_13(%arg0: i32, %arg1: i32) -> (i32, i32, i32) {
    %c0_i32 = arith.constant 0 : i32
    %c0_i32_0 = arith.constant 0 : i32
    %c0_i32_1 = arith.constant 0 : i32
    return %arg0, %c0_i32, %c0_i32_0 : i32, i32, i32
  }
}

</mosaic_0001>

<bundles_post_ra>
// kernel: tpu_custom_call.1
= control target key start
LH: loop header
LB: loop body
LE: loop exit
PB: predicated region body
PF: predicated region fallthrough
CT: control target
= control target key end

     0   :  { %s2835_s0 = inlined_call_operand.hbm [shape: f32[2,8,32], index: 0, kind: input, shape index: {}]   ;;  %s2836_s1 = inlined_call_operand.vmem [shape: f32[2,32,96], index: 1, kind: input, shape index: {}]   ;;  %s2837_s2 = inlined_call_operand.vmem [shape: f32[2,1,96], index: 2, kind: input, shape index: {}]   ;;  %s2838_s3 = inlined_call_operand.vmem [shape: f32[2,32,32], index: 3, kind: input, shape index: {}]   ;;  %s2839_s4 = inlined_call_operand.vmem [shape: f32[2,1,32], index: 4, kind: input, shape index: {}]   ;;  %s2840_s5 = inlined_call_operand.vmem [shape: f32[2,1,32], index: 5, kind: input, shape index: {}]   ;;  %s2841_s6 = inlined_call_operand.vmem [shape: f32[2,1,32], index: 6, kind: input, shape index: {}]   ;;  %s2842_s7 = inlined_call_operand.vmem [shape: f32[2,32,64], index: 7, kind: input, shape index: {}]   ;;  %s2843_s8 = inlined_call_operand.vmem [shape: f32[2,1,64], index: 8, kind: input, shape index: {}]   ;;  %s2844_s9 = inlined_call_operand.vmem [shape: f32[2,64,32], index: 9, kind: input, shape index: {}]   ;;  %s2845_s10 = inlined_call_operand.vmem [shape: f32[2,1,32], index: 10, kind: input, shape index: {}]   ;;  %s2846_s11 = inlined_call_operand.vmem [shape: f32[2,1,32], index: 11, kind: input, shape index: {}]   ;;  %s2847_s12 = inlined_call_operand.vmem [shape: f32[2,1,32], index: 12, kind: input, shape index: {}]   ;;  %s2848_s13 = inlined_call_operand.hbm [shape: f32[2,8,32], index: 13, kind: output, shape index: {}]  }
   0x1   :  { %2856 = sst [smem:[#allocation11_spill]] %s2835_s0 }
   0x2   :  { %2857 = sst [smem:[#allocation12_spill]] %s2836_s1 }
   0x3   :  { %2858 = sst [smem:[#allocation13_spill]] %s2838_s3 }
   0x4   :  { %2859 = sst [smem:[#allocation14_spill]] %s2848_s13 }
   0x5   :  { %18 = vsyncpa [#allocation3], 0 }
   0x6   :  { %19 = vsyncpa [#allocation4], 0  ;;  %s2540_s25 = smov 0   ;;  %s2542_s26 = smov 0  }
   0x7   :  { %s2544_s27 = smov 0  }
   0x8 LB: > { %2860 = sst [smem:[#allocation8_spill]] %s2451_s26  ;;  %s2852_s28 = sadd.s32 4294967295, %s2455_s27   ;;  %s2455_s27 = sphi %s2544_s27, %s25_s27   ;;  %s2451_s26 = sphi %s2542_s26, %s2881_s26   ;;  %s2447_s25 = sphi %s2540_s25, %s2880_s25  }
   0x9   : > { %2861 = sst [smem:[#allocation9_spill]] %s2455_s27  ;;  %s34_s29 = sadd.s32 1, %s2451_s26 }
   0xa   : > { %p35_p0 = scmp.ge.s32.totalorder %s34_s29, 2  ;;  %p2057_p1 = scmp.ge.s32.totalorder %s2455_s27, 1 }
   0xb   : > { %p406_p2 = scmp.lt.s32.totalorder %s2455_s27, 3  ;;  %p2567_p4 = scmp.eq.s32.totalorder %s2852_s28, 0 }
   0xc   : > { %s2883_s29 = smov (%p35_p0, %s34_s29), 0  ;;  %s2457_s15 = smov [#allocation2]  }
   0xd   : > { %2862 = sst [smem:[#allocation10_spill]] %s2883_s29  ;;  %p2561_p3 = pnand %p2057_p1, %p406_p2 }
   0xe   : > { %s2864_s14 = scalar_select %p2567_p4, 1, 0 }
   0xf   : > { %s2863_s30 = scalar_select %p2561_p3, 1, 0 }
  0x10   : > { %p2302_p5 = pneg %p2561_p3  ;;  %s421_s16 = sshll.u32 %s2457_s15, 4  ;;  %s422_s16 = int_to_ptr.vmem [resolvable:$true] %s421_s16 }
  0x11   : > { %s2866_s0 = sld [smem:[#allocation11_spill]] }
  0x12   : > { %p2575_p6 = pnand %p2567_p4, %p2302_p5 }
  0x14   : > { %p2373_p8 = pneg %p2575_p6 }
  0x17   : > { %s2371_s20 = scalar_lea.hbm %s2866_s0, 256 }
  0x18   : > { %p2372_p7 = scmp.ne.s32.totalorder %s2866_s0, %s2371_s20  ;;  %p2378_p11 = scmp.lt.u32.totalorder %s2371_s20, %s2866_s0 }
  0x1a   : > { %p2374_p9 = pnand %p2373_p8, %p2372_p7 }
  0x1c   : > { %p2375_p10 = pneg %p2374_p9 }
  0x1e   : > { %p2380_p12 = pnand %p2378_p11, %p2375_p10 }
  0x20   : > { %2383 = shalt.err (!%p2380_p12)
}
  0x21   : > { %s2384_s15 = scalar_lea.vmem %s422_s16, 256  ;;  %p2392_p2 = scmp.lt.s32.totalorder %s422_s16, %s422_s16 }
  0x22   : > { %p2385_p13 = scmp.ne.s32.totalorder %s422_s16, %s2384_s15  ;;  %p2393_p5 = scmp.lt.s32.totalorder %s2384_s15, %s2384_s15 }
  0x24   : > { %p2387_p0 = pnand %p2385_p13, %p2373_p8  ;;  %p2394_p4 = por %p2393_p5, %p2392_p2 }
  0x26   : > { %p2388_p1 = pneg %p2387_p0 }
  0x28   : > { %p2395_p3 = pnand %p2394_p4, %p2388_p1 }
  0x2a   : > { %2398 = shalt.err (!%p2395_p3)
}
  0x2b   : > { %s2458_s18 = smov 128   ;;  %s2459_s19 = smov 8  }
  0x2c   : > { %2305 = dma.hbm_to_vmem [thread:$0]  (!%p2575_p6), %s2866_s0, 256, %s422_s16, [#allocation3], %s2458_s18, %s2458_s18, %s2459_s19  }
  0x2d   : > { %p2867_p7 = scmp.ne.s32.totalorder %s2863_s30, 0 }
  0x2e   : > { %p2868_p9 = scmp.ne.s32.totalorder (!%p2867_p7), %s2864_s14, 0 }
  0x2f   : > { %517 = sbr.rel (%p2867_p7) target bundleno = 3192 (0xc78), region = 72 }
  0x36   : > { %2438 = dma.done.wait (%p2868_p9), [#allocation3], 256  }
  0x37   : > { %2440 = vsyncadd (%p2868_p9), [#allocation3], 4294967040  ;;  %p596_p3 = scmp.lt.s32.totalorder %s2447_s25, 1  ;;  %s2869_s1 = sld [smem:[#allocation12_spill]] }
  0x38   : > { %s2870_s3 = sld [smem:[#allocation13_spill]]  ;;  %p2070_p4 = scmp.ne.s32.totalorder %s2447_s25, 0 }
  0x39   : > { %s2603_s20 = scalar_select %p596_p3, %s2447_s25, 1 }
  0x3a   : > { %644 = sbr.rel (%p2070_p4) target bundleno = 65 (0x41), region = 80  ;;  %v645_v0 = vld [vmem:[#allocation2] sm:$0xff] (!%p2070_p4)  ;;  %vm647_vm0 = vcmask (!%p2070_p4), 261120   ;;  %v646_v1 = vld [vmem:[#allocation2 + $0x8] sm:$0xff] (!%p2070_p4) }
  0x3b   : > { %s2105_s30 = sshll.u32 %s2603_s20, 5  ;;  %s633_s27 = scalar_lea.vmem %s2845_s10, %s2603_s20  ;;  %648 = vst.msk [vmem:[#allocation5] sm:$0xff] (!%p2070_p4), %vm647_vm0, %v645_v0  ;;  %649 = vst.msk [vmem:[#allocation5 + $0x8] sm:$0xff] (!%p2070_p4), %vm647_vm0, %v646_v1 }
  0x3c   : > { %s2633_s24 = scalar_lea.vmem %s2842_s7, %s2105_s30  ;;  %s636_s14 = scalar_lea.vmem %s2846_s11, %s2603_s20 }
  0x3d   : > { %s600_s15 = scalar_lea.vmem %s2869_s1, %s2105_s30  ;;  %s625_s1 = scalar_lea.vmem %s2843_s8, %s2603_s20 }
  0x3e   : > { %s2616_s21 = scalar_lea.vmem %s2870_s3, %s2105_s30  ;;  %s2108_s3 = sshll.u32 %s2603_s20, 6 }
  0x3f   : > { %s2643_s0 = scalar_lea.vmem %s2844_s9, %s2108_s3  ;;  %s639_s13 = scalar_lea.vmem %s2847_s12, %s2603_s20 }
  0x41 PF: > { %v652_v2 = vld [vmem:[%s600_s15] sm:$0xff]  ;;  %v653_v3 = vld [vmem:[%s600_s15 + $0x8] sm:$0xff]  ;;  %v654_v4 = vld [vmem:[%s600_s15 + $0x10] sm:$0xff]  ;;  %vm663_vm1 = vcmask 261120   ;;  %v2460_v10 = vmov 0.0   ;;  %vm2461_vm2 = vmmov 0   ;;  %s2872_s16 = scalar_lea.vmem %s2839_s4, %s2603_s20  ;;  %s2873_s30 = scalar_lea.vmem %s2840_s5, %s2603_s20 }
  0x42   : > { %v2250_v5 = vpack.c.bf16 %v653_v3, %v652_v2  ;;  %v655_v6 = vld [vmem:[%s600_s15 + $0x18] sm:$0xff]  ;;  %v2658_v7 = vld [vmem:[#allocation5] sm:$0xff]  ;;  %2176 = vmatprep.subr.mxu0 %v2460_v10  ;;  %2178 = vmatprep.mubr.msk.f32.mxu0 %vm2461_vm2, %v2460_v10  ;;  %s2871_s15 = scalar_lea.vmem %s2837_s2, %s2603_s20  ;;  %s2462_s17 = smov 96   ;;  %vm763_vm3 = vcmask 130048   ;;  %vm917_vm4 = vcmask 64512   ;;  %v747_v37 = vld [vmem:[%s2616_s21] sm:$0xff] }
  0x43   : > { %v2254_v8 = vpack.c.bf16 %v655_v6, %v654_v4  ;;  %2163 = vmatprep.mubr.msk.f32.mxu1 %vm663_vm1, %v2658_v7  ;;  %v2662_v9 = vld [vmem:[#allocation5 + $0x8] sm:$0xff]  ;;  %v2071_v11 = vld [vmem:[%s2871_s15] ss:$0 sm:$0xff]  ;;  %s2463_s18 = smov 64   ;;  %s2464_s19 = smov 112   ;;  %v748_v38 = vld [vmem:[%s2616_s21 + $0x8] sm:$0xff] }
  0x44   : > { %2251 = vmatprep.subr.bf16.mxu1 %v2250_v5  ;;  %s2465_s28 = smov 80   ;;  %v2258_v39 = vpack.c.bf16 %v748_v38, %v747_v37  ;;  %s2466_s22 = smov 48   ;;  %vm1742_vm5 = vcmask 523264  }
  0x45   : > { %2253 = vmatpush3.bf16.msra.mxu1 %v2250_v5  ;;  %s2874_s25 = scalar_lea.vmem %s2841_s6, %s2603_s20  ;;  %s2467_s26 = smov [#allocation5]  }
  0x46   : > { %2255 = vmatprep.subr.bf16.mxu1 %v2254_v8  ;;  %s1881_s29 = sshll.u32 %s2467_s26, 4  ;;  %s1882_s29 = int_to_ptr.vmem [resolvable:$true] %s1881_s29 }
  0x47   : > { %p2406_p12 = scmp.lt.s32.totalorder %s1882_s29, %s1882_s29 }
  0x49   : > { %2257 = vmatpush3.bf16.msra.mxu1 %v2254_v8 }
  0x4a   : > { %2166 = vmatprep.subr.mxu1 %v2460_v10 }
  0x4c   : > { %2164 = vmatmul.mubr.msk.f32.vlgmr.msra.gmra.mrb[0].mxu1 %vm663_vm1, %v2662_v9 }
  0x4d   : > { %2168 = vmatprep.mubr.msk.f32.mxu1 %vm2461_vm2, %v2460_v10 }
 0x11f   : > { %v2165_v12 = vpop.f32.mrb[0].mxu1 }
 0x120   : > { %v736_v13 = vpop.f32.mrb[1].mxu1  ;;  %v2680_v15 = vadd.f32 %v2165_v12, %v2071_v11 }
 0x121   : > { %v2677_v14 = vadd.f32 %v2071_v11, %v736_v13 }
 0x122   : > { %v746_v19 = vmul.f32 0.25, %v2680_v15 }
 0x123   : > { %761 = vrot.lane.b32.xlu0 %v2677_v14, %s2462_s17  ;;  %v745_v17 = vmul.f32 0.25, %v2677_v14 }
 0x127   : > { %840 = vrot.lane.b32.xlu0 %v2680_v15, %s2462_s17 }
 0x195   : > { %v762_v16 = vpop.permute.xlu0 %761 }
 0x196   : > { %2167 = vmatpush3.xpose.msk.msra.mxu1 %vm763_vm3, %v762_v16 }
 0x197   : > { %2171 = vmatprep.subr.mxu1 %v2460_v10 }
 0x199   : > { %v841_v18 = vpop.permute.xlu0 %840  ;;  %2169 = vmatmul.mubr.msk.f32.vlgmr.msra.gmra.mrb[2].mxu1 %vm763_vm3, %v745_v17 }
 0x19a   : > { %2172 = vmatpush3.xpose.msk.msra.mxu1 %vm763_vm3, %v841_v18  ;;  %2173 = vmatprep.mubr.msk.f32.mxu1 %vm2461_vm2, %v2460_v10  ;;  %v749_v18 = vld [vmem:[%s2616_s21 + $0x10] sm:$0xff] }
 0x19b   : > { %2181 = vmatprep.subr.mxu1 %v2460_v10 }
 0x19d   : > { %2174 = vmatmul.mubr.msk.f32.vlgmr.msra.gmra.mrb[4].mxu1 %vm763_vm3, %v746_v19 }
 0x19e   : > { %2183 = vmatprep.mubr.msk.f32.mxu1 %vm2461_vm2, %v2460_v10 }
 0x26c   : > { %v835_v20 = vpop.f32.mrb[2].mxu1 }
 0x26d   : > { %v2170_v21 = vpop.f32.mrb[3].mxu1  ;;  %v918_v22 = vsel %vm917_vm4, %v835_v20, -inf }
 0x26e   : > { %919 = vmax.xlane.f32.xlu1 %v918_v22 }
 0x270   : > { %v913_v23 = vpop.f32.mrb[4].mxu1 }
 0x271   : > { %v2175_v24 = vpop.f32.mrb[5].mxu1  ;;  %v921_v25 = vsel %vm917_vm4, %v913_v23, -inf }
 0x272   : > { %922 = vmax.xlane.f32.xlu1 %v921_v25  ;;  %v2074_v24 = vld [vmem:[%s2872_s16] ss:$0 sm:$0xff] }
 0x273   : > { %v759_v25 = vadd.f32 %v2074_v24, %v2662_v9 }
 0x283   : > { %940 = vrot.lane.b32.xlu1 %v2677_v14, %s2463_s18 }
 0x2fb   : > { %v920_v26 = vpop.xlane.xlu1 %919 }
 0x2fc   : > { %v924_v27 = vsub.f32 %v835_v20, %v920_v26  ;;  %v758_v26 = vadd.f32 %v2074_v24, %v2658_v7 }
 0x2fe   : > { %v926_v28 = vmul.f32 1.442695, %v924_v27 }
 0x2ff   : > { %v923_v29 = vpop.xlane.xlu1 %922 }
 0x300   : > { %2347 = vpow2.f32 %v926_v28  ;;  %v925_v30 = vsub.f32 %v913_v23, %v923_v29 }
 0x302   : > { %v928_v31 = vmul.f32 1.442695, %v925_v30 }
 0x303   : > { %v941_v32 = vpop.permute.xlu1 %940 }
 0x304   : > { %2349 = vpow2.f32 %v928_v31  ;;  %2177 = vmatpush3.msra.mxu0 %v941_v32 }
 0x305   : > { %2259 = vmatprep.subr.bf16.mxu0 %v2258_v39 }
 0x30a   : > { %v2348_v33 = vpop.eup %2347 }
 0x30b   : > { %v930_v34 = vsel %vm917_vm4, %v2348_v33, 0.0 }
 0x30c   : > { %931 = vadd.xlane.f32.xlu0 %v930_v34 }
 0x30e   : > { %v2350_v35 = vpop.eup %2349 }
 0x30f   : > { %v933_v36 = vsel %vm917_vm4, %v2350_v35, 0.0 }
 0x310   : > { %934 = vadd.xlane.f32.xlu1 %v933_v36 }
 0x321   : > { %1016 = vrot.lane.b32.xlu1 %v2680_v15, %s2463_s18 }
 0x322   : > { %1175 = vrot.lane.b32.xlu0 %v745_v17, %s2464_s19 }
 0x325   : > { %1177 = vrot.lane.b32.xlu1 %v2677_v14, %s2465_s28 }
 0x329   : > { %1255 = vrot.lane.b32.xlu1 %v2680_v15, %s2465_s28 }
 0x32d   : > { %1253 = vrot.lane.b32.xlu1 %v746_v19, %s2464_s19  ;;  %v750_v19 = vld [vmem:[%s2616_s21 + $0x18] sm:$0xff] }
 0x32e   : > { %v2262_v20 = vpack.c.bf16 %v750_v19, %v749_v18 }
 0x399   : > { %v932_v40 = vpop.xlane.xlu0 %931 }
 0x39a   : > { %2351 = vrcp.f32 %v932_v40 }
 0x39d   : > { %v935_v41 = vpop.xlane.xlu1 %934  ;;  %v1176_v48 = vpop.permute.xlu0 %1175 }
 0x39e   : > { %2353 = vrcp.f32 %v935_v41  ;;  %v1633_v41 = vld [vmem:[%s2633_s24] sm:$0xff] }
 0x3a1   : > { %v1017_v42 = vpop.permute.xlu1 %1016 }
 0x3a2   : > { %2182 = vmatpush3.msra.mxu1 %v1017_v42  ;;  %v1634_v42 = vld [vmem:[%s2633_s24 + $0x8] sm:$0xff] }
 0x3a3   : > { %2193 = vmatprep.subr.mxu1 %v2460_v10 }
 0x3a4   : > { %v2352_v43 = vpop.eup %2351 }
 0x3a5   : > { %v938_v44 = vmul.f32 %v2352_v43, %v2348_v33  ;;  %v1178_v47 = vpop.permute.xlu1 %1177  ;;  %v2266_v43 = vpack.c.bf16 %v1634_v42, %v1633_v41 }
 0x3a7   : > { %2179 = vmatmul.mubr.msk.f32.vlgmr.msra.gmra.mrb[0].mxu0 %vm917_vm4, %v938_v44  ;;  %v1635_v44 = vld [vmem:[%s2633_s24 + $0x10] sm:$0xff] }
 0x3a8   : > { %v2354_v45 = vpop.eup %2353  ;;  %2261 = vmatpush3.bf16.msra.mxu0 %v2258_v39 }
 0x3a9   : > { %v939_v46 = vmul.f32 %v2354_v45, %v2350_v35  ;;  %2198 = vmatprep.subr.mxu0 %v2460_v10  ;;  %v1256_v51 = vpop.permute.xlu1 %1255  ;;  %v1636_v45 = vld [vmem:[%s2633_s24 + $0x18] sm:$0xff] }
 0x3ab   : > { %2184 = vmatmul.mubr.msk.f32.vlgmr.msra.gmra.mrb[6].mxu1 %vm917_vm4, %v939_v46  ;;  %v2270_v46 = vpack.c.bf16 %v1636_v45, %v1635_v44  ;;  %v2099_v44 = vld [vmem:[%s636_s14] ss:$0 sm:$0xff]  ;;  %s2399_s14 = scalar_lea.vmem %s1882_s29, 256 }
 0x3ac   : > { %2194 = vmatpush3.xpose.msk.msra.mxu1 %vm763_vm3, %v1178_v47  ;;  %2195 = vmatprep.mubr.msk.f32.mxu1 %vm2461_vm2, %v2460_v10  ;;  %v1727_v47 = vld [vmem:[%s2643_s0] sm:$0xff]  ;;  %p2400_p8 = scmp.ne.s32.totalorder %s1882_s29, %s2399_s14  ;;  %p2407_p13 = scmp.lt.s32.totalorder %s2399_s14, %s2399_s14 }
 0x3ad   : > { %2203 = vmatprep.subr.mxu1 %v2460_v10  ;;  %v1254_v54 = vpop.permute.xlu1 %1253 }
 0x3ae   : > { %p2408_p0 = por %p2407_p13, %p2406_p12 }
 0x3af   : > { %2196 = vmatmul.mubr.msk.f32.vlgmr.msra.gmra.mrb[8].mxu1 %vm763_vm3, %v1176_v48  ;;  %v1728_v48 = vld [vmem:[%s2643_s0 + $0x8] sm:$0xff] }
 0x3b0   : > { %2205 = vmatprep.mubr.msk.f32.mxu1 %vm2461_vm2, %v2460_v10 }
 0x47a   : > { %v1012_v49 = vpop.f32.mrb[0].mxu0 }
 0x47b   : > { %v2180_v50 = vpop.f32.mrb[1].mxu0  ;;  %2190 = vmatprep.mubr.msk.f32.mxu0 %vm763_vm3, %v1012_v49  ;;  %v1729_v49 = vld [vmem:[%s2643_s0 + $0x10] sm:$0xff] }
 0x47c   : > { %v2274_v50 = vpack.c.bf16 %v1728_v48, %v1727_v47  ;;  %v2100_v48 = vld [vmem:[%s639_s13] ss:$0 sm:$0xff] }
 0x47e   : > { %v1088_v52 = vpop.f32.mrb[6].mxu1 }
 0x47f   : > { %v2185_v53 = vpop.f32.mrb[7].mxu1  ;;  %2191 = vmatmul.mubr.msk.f32.vlgmr.msra.gmra.mrb[2].mxu0 %vm763_vm3, %v1088_v52 }
 0x480   : > { %2199 = vmatpush3.xpose.msk.msra.mxu0 %vm763_vm3, %v1256_v51  ;;  %2200 = vmatprep.mubr.msk.f32.mxu0 %vm2461_vm2, %v2460_v10  ;;  %v1730_v51 = vld [vmem:[%s2643_s0 + $0x18] sm:$0xff]  ;;  %v1731_v53 = vld [vmem:[%s2643_s0 + $0x20] sm:$0xff] }
 0x481   : > { %2208 = vmatprep.subr.mxu0 %v2460_v10  ;;  %v2278_v52 = vpack.c.bf16 %v1730_v51, %v1729_v49 }
 0x482   : > { %v1249_v55 = vpop.f32.mrb[8].mxu1 }
 0x483   : > { %v2197_v56 = vpop.f32.mrb[9].mxu1  ;;  %2201 = vmatmul.mubr.msk.f32.vlgmr.msra.gmra.mrb[4].mxu0 %vm763_vm3, %v1254_v54  ;;  %v1331_v57 = vsel %vm917_vm4, %v1249_v55, -inf  ;;  %v1732_v54 = vld [vmem:[%s2643_s0 + $0x28] sm:$0xff] }
 0x484   : > { %1332 = vmax.xlane.f32.xlu1 %v1331_v57  ;;  %2210 = vmatprep.mubr.msk.f32.mxu0 %vm2461_vm2, %v2460_v10 }
 0x511   : > { %v1333_v58 = vpop.xlane.xlu1 %1332 }
 0x512   : > { %v1337_v59 = vsub.f32 %v1249_v55, %v1333_v58  ;;  %v2282_v55 = vpack.c.bf16 %v1732_v54, %v1731_v53 }
 0x514   : > { %v1339_v60 = vmul.f32 1.442695, %v1337_v59 }
 0x516   : > { %2355 = vpow2.f32 %v1339_v60 }
 0x520   : > { %v2356_v61 = vpop.eup %2355 }
 0x521   : > { %v1343_v62 = vsel %vm917_vm4, %v2356_v61, 0.0 }
 0x522   : > { %1344 = vadd.xlane.f32.xlu1 %v1343_v62 }
 0x556   : > { %v1327_v63 = vpop.f32.mrb[4].mxu0 }
 0x557   : > { %v2202_v0 = vpop.f32.mrb[5].mxu0  ;;  %v1334_v1 = vsel %vm917_vm4, %v1327_v63, -inf }
 0x558   : > { %1335 = vmax.xlane.f32.xlu0 %v1334_v1 }
 0x56e   : > { %1429 = vrot.lane.b32.xlu0 %v2680_v15, %s2466_s22 }
 0x5af   : > { %v1345_v10 = vpop.xlane.xlu1 %1344 }
 0x5e5   : > { %v1336_v2 = vpop.xlane.xlu0 %1335 }
 0x5e6   : > { %v1338_v3 = vsub.f32 %v1327_v63, %v1336_v2  ;;  %v2091_v63 = vld [vmem:[%s2873_s30] ss:$0 sm:$0xff] }
 0x5e8   : > { %v1341_v4 = vmul.f32 1.442695, %v1338_v3  ;;  %v2092_v3 = vld [vmem:[%s2874_s25] ss:$0 sm:$0xff] }
 0x5e9   : > { %v1430_v5 = vpop.permute.xlu0 %1429 }
 0x5ea   : > { %2357 = vpow2.f32 %v1341_v4  ;;  %2209 = vmatpush3.msra.mxu0 %v1430_v5 }
 0x5eb   : > { %2359 = vrcp.f32 %v1345_v10  ;;  %2263 = vmatprep.subr.bf16.mxu0 %v2262_v20  ;;  %v1733_v10 = vld [vmem:[%s2643_s0 + $0x30] sm:$0xff] }
 0x5f4   : > { %v2358_v6 = vpop.eup %2357 }
 0x5f5   : > { %v1346_v8 = vsel %vm917_vm4, %v2358_v6, 0.0  ;;  %v2360_v12 = vpop.eup %2359 }
 0x5f6   : > { %1347 = vadd.xlane.f32.xlu1 %v1346_v8  ;;  %v1351_v13 = vmul.f32 %v2360_v12, %v2356_v61 }
 0x607   : > { %1353 = vrot.lane.b32.xlu1 %v2677_v14, %s2466_s22 }
 0x683   : > { %v1348_v11 = vpop.xlane.xlu1 %1347 }
 0x684   : > { %2361 = vrcp.f32 %v1348_v11  ;;  %v1734_v11 = vld [vmem:[%s2643_s0 + $0x38] sm:$0xff]  ;;  %s2875_s0 = sld [smem:[#allocation9_spill]] }
 0x685   : > { %v2286_v12 = vpack.c.bf16 %v1734_v11, %v1733_v10 }
 0x687   : > { %v1354_v15 = vpop.permute.xlu1 %1353 }
 0x688   : > { %2204 = vmatpush3.msra.mxu1 %v1354_v15 }
 0x689   : > { %2206 = vmatmul.mubr.msk.f32.vlgmr.msra.gmra.mrb[10].mxu1 %vm917_vm4, %v1351_v13  ;;  %2267 = vmatprep.subr.bf16.mxu1 %v2266_v43  ;;  %v2093_v13 = vld [vmem:[%s625_s1] ss:$0 sm:$0xff] }
 0x68a   : > { %2269 = vmatpush3.bf16.msra.mxu1 %v2266_v43  ;;  %s2876_s16 = sadd.s32 4294967295, %s2875_s0  }
 0x68b   : > { %2271 = vmatprep.subr.bf16.mxu1 %v2270_v46  ;;  %p2798_p6 = scmp.eq.s32.totalorder %s2876_s16, 1 }
 0x68d   : > { %p2401_p10 = pnand %p2400_p8, %p2798_p6 }
 0x68e   : > { %v2362_v16 = vpop.eup %2361  ;;  %2273 = vmatpush3.bf16.msra.mxu1 %v2270_v46 }
 0x68f   : > { %v1352_v17 = vmul.f32 %v2362_v16, %v2358_v6  ;;  %p2402_p11 = pneg %p2401_p10 }
 0x691   : > { %2211 = vmatmul.mubr.msk.f32.vlgmr.msra.gmra.mrb[6].mxu0 %vm917_vm4, %v1352_v17  ;;  %p2409_p1 = pnand %p2408_p0, %p2402_p11 }
 0x692   : > { %2265 = vmatpush3.bf16.msra.mxu0 %v2262_v20 }
 0x693   : > { %2275 = vmatprep.subr.bf16.mxu0 %v2274_v50 }
 0x75c   : > { %v1425_v14 = vpop.f32.mrb[10].mxu1 }
 0x75d   : > { %v2207_v21 = vpop.f32.mrb[11].mxu1  ;;  %2217 = vmatprep.mubr.msk.f32.mxu0 %vm763_vm3, %v1425_v14  ;;  %v2096_v14 = vld [vmem:[%s633_s27] ss:$0 sm:$0xff] }
 0x764   : > { %v1501_v22 = vpop.f32.mrb[6].mxu0 }
 0x765   : > { %v2212_v23 = vpop.f32.mrb[7].mxu0  ;;  %2218 = vmatmul.mubr.msk.f32.vlgmr.msra.gmra.mrb[2].mxu0 %vm763_vm3, %v1501_v22 }
 0x766   : > { %2277 = vmatpush3.bf16.msra.mxu0 %v2274_v50 }
 0x767   : > { %2279 = vmatprep.subr.bf16.mxu0 %v2278_v52 }
 0x76a   : > { %2281 = vmatpush3.bf16.msra.mxu0 %v2278_v52 }
 0x76b   : > { %2283 = vmatprep.subr.bf16.mxu0 %v2282_v55 }
 0x76e   : > { %2285 = vmatpush3.bf16.msra.mxu0 %v2282_v55 }
 0x76f   : > { %2287 = vmatprep.subr.bf16.mxu0 %v2286_v12 }
 0x772   : > { %2289 = vmatpush3.bf16.msra.mxu0 %v2286_v12 }
 0x838   : > { %v2219_v27 = vpop.f32.mrb[2].mxu0 }
 0x839   : > { %v2290_v28 = vadd.f32 %v2219_v27, %v759_v25  ;;  %v1577_v29 = vpop.f32.mrb[3].mxu0 }
 0x83a   : > { %v2291_v30 = vadd.f32 %v1577_v29, %v758_v26 }
 0x83b   : > { %v1593_v31 = vsel %vm663_vm1, %v2290_v28, 0.0 }
 0x83c   : > { %1594 = vadd.xlane.f32.xlu0 %v1593_v31  ;;  %v1590_v32 = vsel %vm663_vm1, %v2291_v30, 0.0 }
 0x83d   : > { %1591 = vadd.xlane.f32.xlu1 %v1590_v32 }
 0x8c9   : > { %v1595_v33 = vpop.xlane.xlu0 %1594 }
 0x8ca   : > { %v1598_v34 = vmul.f32 0.03125, %v1595_v33  ;;  %v1592_v35 = vpop.xlane.xlu1 %1591 }
 0x8cb   : > { %v1597_v9 = vmul.f32 0.03125, %v1592_v35 }
 0x8cc   : > { %v1600_v36 = vsub.f32 %v2290_v28, %v1598_v34 }
 0x8cd   : > { %v1599_v7 = vsub.f32 %v2291_v30, %v1597_v9 }
 0x8ce   : > { %v1602_v37 = vmul.f32 %v1600_v36, %v1600_v36 }
 0x8cf   : > { %v1601_v38 = vmul.f32 %v1599_v7, %v1599_v7 }
 0x8d0   : > { %v1606_v39 = vsel %vm663_vm1, %v1602_v37, 0.0 }
 0x8d1   : > { %1607 = vadd.xlane.f32.xlu0 %v1606_v39  ;;  %v1603_v40 = vsel %vm663_vm1, %v1601_v38, 0.0 }
 0x8d2   : > { %1604 = vadd.xlane.f32.xlu1 %v1603_v40 }
 0x95e   : > { %v1608_v56 = vpop.xlane.xlu0 %1607 }
 0x95f   : > { %v1610_v57 = vmul.f32 0.03125, %v1608_v56  ;;  %v1605_v58 = vpop.xlane.xlu1 %1604 }
 0x960   : > { %v1609_v59 = vmul.f32 0.03125, %v1605_v58 }
 0x961   : > { %v1612_v60 = vadd.f32 1e-05, %v1610_v57 }
 0x962   : > { %v1611_v61 = vadd.f32 1e-05, %v1609_v59 }
 0x963   : > { %2363 = vrsqrt.f32 %v1612_v60 }
 0x964   : > { %2365 = vrsqrt.f32 %v1611_v61 }
 0x96d   : > { %v2364_v62 = vpop.eup %2363 }
 0x96e   : > { %v2366_v0 = vpop.eup %2365  ;;  %v1616_v1 = vmul.f32 %v2364_v62, %v1600_v36 }
 0x96f   : > { %v1615_v2 = vmul.f32 %v2366_v0, %v1599_v7 }
 0x970   : > { %v1624_v4 = vmul.f32 %v2091_v63, %v1616_v1 }
 0x971   : > { %v1623_v5 = vmul.f32 %v2091_v63, %v1615_v2 }
 0x972   : > { %v1632_v8 = vadd.f32 %v2092_v3, %v1624_v4 }
 0x973   : > { %v1631_v6 = vadd.f32 %v2092_v3, %v1623_v5 }
 0x975   : > { %2228 = vmatprep.mubr.msk.f32.mxu1 %vm663_vm1, %v1631_v6 }
 0x976   : > { %2229 = vmatmul.mubr.msk.f32.vlgmr.msra.gmra.mrb[12].mxu1 %vm663_vm1, %v1632_v8 }
 0xa49   : > { %v2230_v15 = vpop.f32.mrb[12].mxu1 }
 0xa4a   : > { %v1722_v16 = vadd.f32 %v2230_v15, %v2093_v13  ;;  %v1716_v17 = vpop.f32.mrb[13].mxu1 }
 0xa4b   : > { %v1717_v18 = vadd.f32 %v2093_v13, %v1716_v17 }
 0xa4c   : > { %v1726_v20 = vmax.f32 %v1722_v16, 0.0 }
 0xa4d   : > { %v1725_v19 = vmax.f32 %v1717_v18, 0.0 }
 0xa4f   : > { %2247 = vmatprep.mubr.msk.f32.mxu0 %vm1742_vm5, %v1725_v19 }
 0xa50   : > { %2248 = vmatmul.mubr.msk.f32.vlgmr.msra.gmra.mrb[8].mxu0 %vm1742_vm5, %v1726_v20 }
 0xb23   : > { %v2249_v21 = vpop.f32.mrb[8].mxu0 }
 0xb24   : > { %v1821_v22 = vadd.f32 %v2249_v21, %v2096_v14  ;;  %v1815_v23 = vpop.f32.mrb[9].mxu0 }
 0xb25   : > { %v1816_v24 = vadd.f32 %v2096_v14, %v1815_v23 }
 0xb26   : > { %v1825_v25 = vadd.f32 %v1821_v22, %v1632_v8 }
 0xb27   : > { %v1824_v26 = vadd.f32 %v1816_v24, %v1631_v6 }
 0xb28   : > { %v1831_v27 = vsel %vm663_vm1, %v1825_v25, 0.0 }
 0xb29   : > { %1832 = vadd.xlane.f32.xlu0 %v1831_v27  ;;  %v1828_v28 = vsel %vm663_vm1, %v1824_v26, 0.0 }
 0xb2a   : > { %1829 = vadd.xlane.f32.xlu1 %v1828_v28 }
 0xbb6   : > { %v1833_v29 = vpop.xlane.xlu0 %1832 }
 0xbb7   : > { %v1835_v30 = vmul.f32 0.03125, %v1833_v29  ;;  %v1830_v31 = vpop.xlane.xlu1 %1829 }
 0xbb8   : > { %v1834_v32 = vmul.f32 0.03125, %v1830_v31 }
 0xbb9   : > { %v1837_v33 = vsub.f32 %v1825_v25, %v1835_v30 }
 0xbba   : > { %v1836_v34 = vsub.f32 %v1824_v26, %v1834_v32 }
 0xbbb   : > { %v1839_v35 = vmul.f32 %v1837_v33, %v1837_v33 }
 0xbbc   : > { %v1838_v9 = vmul.f32 %v1836_v34, %v1836_v34 }
 0xbbd   : > { %v1843_v36 = vsel %vm663_vm1, %v1839_v35, 0.0 }
 0xbbe   : > { %1844 = vadd.xlane.f32.xlu0 %v1843_v36  ;;  %v1840_v7 = vsel %vm663_vm1, %v1838_v9, 0.0 }
 0xbbf   : > { %1841 = vadd.xlane.f32.xlu1 %v1840_v7 }
 0xc4b   : > { %v1845_v37 = vpop.xlane.xlu0 %1844 }
 0xc4c   : > { %v1847_v38 = vmul.f32 0.03125, %v1845_v37  ;;  %v1842_v39 = vpop.xlane.xlu1 %1841 }
 0xc4d   : > { %v1846_v40 = vmul.f32 0.03125, %v1842_v39 }
 0xc4e   : > { %v1849_v41 = vadd.f32 1e-05, %v1847_v38 }
 0xc4f   : > { %v1848_v42 = vadd.f32 1e-05, %v1846_v40 }
 0xc50   : > { %2367 = vrsqrt.f32 %v1849_v41 }
 0xc51   : > { %2369 = vrsqrt.f32 %v1848_v42 }
 0xc5a   : > { %v2368_v43 = vpop.eup %2367 }
 0xc5b   : > { %v2370_v45 = vpop.eup %2369  ;;  %v1853_v46 = vmul.f32 %v2368_v43, %v1837_v33 }
 0xc5c   : > { %v1852_v47 = vmul.f32 %v2370_v45, %v1836_v34 }
 0xc5d   : > { %v1861_v49 = vmul.f32 %v2099_v44, %v1853_v46 }
 0xc5e   : > { %v1860_v50 = vmul.f32 %v2099_v44, %v1852_v47 }
 0xc5f   : > { %v1869_v51 = vadd.f32 %v2100_v48, %v1861_v49 }
 0xc60   : > { %v1868_v52 = vadd.f32 %v2100_v48, %v1860_v50 }
 0xc61   : > { %1871 = vst.msk [vmem:[#allocation5 + $0x8] sm:$0xff] %vm663_vm1, %v1869_v51 }
 0xc62   : > { %1870 = vst.msk [vmem:[#allocation5] sm:$0xff] %vm663_vm1, %v1868_v52 }
 0xc63   : > { %2412 = shalt.err (!%p2409_p1)
}
 0xc64   : > { %s2878_s24 = sld [smem:[#allocation14_spill]] }
 0xc6a   : > { %s2413_s30 = scalar_lea.hbm %s2878_s24, 256 }
 0xc6b   : > { %p2414_p2 = scmp.ne.s32.totalorder %s2878_s24, %s2413_s30  ;;  %p2419_p9 = scmp.lt.u32.totalorder %s2413_s30, %s2878_s24 }
 0xc6d   : > { %p2415_p5 = pnand %p2414_p2, %p2798_p6 }
 0xc6f   : > { %p2416_p7 = pneg %p2415_p5 }
 0xc71   : > { %p2421_p3 = pnand %p2419_p9, %p2416_p7 }
 0xc73   : > { %2424 = shalt.err (!%p2421_p3)
}
 0xc74   : > { %s2468_s17 = smov 128   ;;  %s2469_s18 = smov 8  }
 0xc75   : > { %2299 = dma.vmem_to_hbm [thread:$0]  (%p2798_p6), %s1882_s29, 256, %s2878_s24, [#allocation4], %s2468_s17, %s2468_s17, %s2469_s18  }
 0xc76   : > { %2442 = dma.done.wait (%p2798_p6), [#allocation4], 256  }
 0xc77   : > { %2444 = vsyncadd (%p2798_p6), [#allocation4], 4294967040 }
 0xc78 PF: > { %s2879_s1 = sld [smem:[#allocation9_spill]]  ;;  %s2880_s25 = sld [smem:[#allocation8_spill]] }
 0xc79   : > { %s2881_s26 = sld [smem:[#allocation10_spill]] }
 0xc7e   : > { %s25_s27 = sadd.s32 1, %s2879_s1  }
 0xc7f   : > { %p22_p4 = scmp.ge.s32.totalorder %s25_s27, 4  }
 0xc81   :  { %24 = sbr.rel (!%p22_p4) target bundleno = 8 (0x8), region = 143 }
 0xc88   :  { %1897 = vsyncpa [#allocation3], 1 }
 0xc89   :  { %1899 = vsyncpa [#allocation3 + $0x1], 1 }
 0xc8a   :  { %1900 = vsyncpa [#allocation4], 1 }
 0xc8b   :  { %1902 = vsyncpa [#allocation4 + $0x1], 1 }

</bundles_post_ra>
